<compile_context>
chip_gen: v5e
topology: v5e:2x2
jax: 0.10.0
libtpu: 0.0.40
codegen_flags: <defaults>
</compile_context>

<pallas_src>
import jax
import jax.numpy as jnp
from jax.experimental import pallas as pl
from jax.experimental.pallas import tpu as pltpu

_LANE = 128
# ~2 MiB per block -> (2 arrays x 2 pipeline buffers) = 8 MiB VMEM footprint,
# safely under v5e's 16 MiB scoped default, v6e/v7x 32 MiB scoped defaults.
_TARGET_BLOCK_BYTES = 2 * 1024 * 1024


def _copy_kernel(x_ref, o_ref):
    # Identity / copy: unsqueeze does not change any element values.
    o_ref[...] = x_ref[...]


def _round_up(n, m):
    return ((n + m - 1) // m) * m


def _cdiv(a, b):
    return -(-a // b)


def _sublane_multiple(itemsize):
    # Sub-32-bit dtypes pack along sublanes: bf16 -> 16 rows / vreg, int8/fp8 -> 32.
    return {1: 32, 2: 16}.get(itemsize, 8)


def _pallas_copy_2d(x2d, tm):
    """Tiled lane-dense identity copy of a (rows, cols) slab."""
    rows, cols = x2d.shape
    assert rows % tm == 0 and cols % _LANE == 0
    itemsize = jnp.dtype(x2d.dtype).itemsize
    return pl.pallas_call(
        _copy_kernel,
        out_shape=jax.ShapeDtypeStruct((rows, cols), x2d.dtype),
        grid_spec=pltpu.PrefetchScalarGridSpec(
            num_scalar_prefetch=0,
            grid=(rows // tm,),
            in_specs=[pl.BlockSpec((tm, cols), lambda i: (i, 0))],
            out_specs=pl.BlockSpec((tm, cols), lambda i: (i, 0)),
        ),
        # Pure memory op: let XLA alias the buffer (donation permitting) and
        # schedule it correctly in larger programs.
        input_output_aliases={0: 0},
        cost_estimate=pl.CostEstimate(
            flops=0,
            transcendentals=0,
            bytes_accessed=2 * rows * cols * itemsize,
        ),
        compiler_params=pltpu.CompilerParams(
            dimension_semantics=("parallel",),  # row axis shards over v7x's 2 TCs
        ),
    )(x2d)


def unsqueeze(x, dim):
    """Pallas-backed equivalent of torch.Tensor.unsqueeze(dim)."""
    nd = x.ndim
    # torch.unsqueeze accepts dim in [-(nd+1), nd]
    if dim < 0:
        dim = dim + nd + 1
    assert 0 <= dim <= nd, f"invalid unsqueeze dim {dim} for rank {nd}"
    out_shape = x.shape[:dim] + (1,) + x.shape[dim:]

    total = x.size
    if total == 0:
        # Nothing to copy; pure metadata change.
        return jnp.reshape(x, out_shape)

    itemsize = jnp.dtype(x.dtype).itemsize
    sub = _sublane_multiple(itemsize)

    # Lane-dense 2D layout: wide cols (multiple of 128) for unmasked vst stores,
    # capped so tiny inputs aren't massively over-padded.
    cols = min(8 * _LANE, _round_up(max(1, _cdiv(total, sub)), _LANE))
    rows_needed = _cdiv(total, cols)

    # Row tile: target ~2 MiB per block, dtype-aware sublane alignment.
    tm = max(sub, (_TARGET_BLOCK_BYTES // (cols * itemsize)) // sub * sub)
    tm = min(tm, _round_up(rows_needed, sub))
    rows = _round_up(rows_needed, tm)

    flat = jnp.reshape(x, (-1,))
    pad = rows * cols - total
    if pad:
        # Non-(cols)-divisible sizes: pad to the tile grid, slice off afterwards
        # (avoids the old single-huge-block VMEM cliff).
        flat = jnp.pad(flat, (0, pad))

    y2d = _pallas_copy_2d(jnp.reshape(flat, (rows, cols)), tm)

    y_flat = jnp.reshape(y2d, (-1,))
    if pad:
        y_flat = y_flat[:total]
    return jnp.reshape(y_flat, out_shape)


class Unsqueeze:
    """Mirror of federatedml's Unsqueeze op (no parameters)."""

    def __init__(self, dim):
        assert isinstance(dim, int)
        self.dim = dim

    def __call__(self, tensor):
        return unsqueeze(tensor, self.dim)


if __name__ == "__main__":
    key = jax.random.PRNGKey(0)
    k0, k1, k2 = jax.random.split(key, 3)

    # NCHW-style input, consistent with how this op is used in CV pipelines.
    x = jax.random.normal(k0, (2, 4, 16, 16), dtype=jnp.float32)

    y = jax.block_until_ready(Unsqueeze(1)(x))
    ref = jnp.expand_dims(x, 1)
    assert y.shape == ref.shape == (2, 1, 4, 16, 16), y.shape
    assert y.dtype == x.dtype
    assert bool(jnp.array_equal(y, ref))

    # Negative dim, as torch allows dim in [-(nd+1), nd].
    y2 = jax.block_until_ready(Unsqueeze(-1)(x))
    assert y2.shape == (2, 4, 16, 16, 1)
    assert bool(jnp.array_equal(y2, jnp.expand_dims(x, -1)))

    # Non-128-divisible element count exercises the padded tiled path.
    x3 = jax.random.normal(k1, (3, 5, 7), dtype=jnp.float32)
    y3 = jax.block_until_ready(Unsqueeze(0)(x3))
    assert y3.shape == (1, 3, 5, 7)
    assert bool(jnp.array_equal(y3, jnp.expand_dims(x3, 0)))

    # bf16 exercises the dtype-aware (sublane-packed) row tiling.
    x4 = jax.random.normal(k2, (2, 256), dtype=jnp.bfloat16)
    y4 = jax.block_until_ready(Unsqueeze(1)(x4))
    assert y4.shape == (2, 1, 256)
    assert bool(jnp.array_equal(y4, jnp.expand_dims(x4, 1)))

    print("KERNEL_OK")
</pallas_src>

<mosaic_0001>
module attributes {stable_mosaic.version = 11 : i64} {
  func.func @_copy_kernel(%arg0: i32, %arg1: memref<8x256xf32, #tpu.memory_space<vmem>>, %arg2: memref<8x256xf32, #tpu.memory_space<vmem>>) attributes {dimension_semantics = [#tpu.dimension_semantics<parallel>], iteration_bounds = array<i64: 1>, scalar_prefetch = 0 : i64, scratch_operands = 0 : i64, tpu.core_type = #tpu.core_type<tc>, window_params = [{transform_indices = @transform_0, window_bounds = array<i64: 8, 256>}, {transform_indices = @transform_1, window_bounds = array<i64: 8, 256>}]} {
    %c0 = arith.constant 0 : index
    %c0_0 = arith.constant 0 : index
    %0 = vector.load %arg1[%c0, %c0_0] : memref<8x256xf32, #tpu.memory_space<vmem>>, vector<8x256xf32>
    %c0_1 = arith.constant 0 : index
    %c0_2 = arith.constant 0 : index
    %1 = vector.load %arg2[%c0_1, %c0_2] : memref<8x256xf32, #tpu.memory_space<vmem>>, vector<8x256xf32>
    tpu.vector_store %arg2[%c0_1, %c0_2], %0 {strides = array<i32>} : memref<8x256xf32, #tpu.memory_space<vmem>>, vector<8x256xf32>,
    return
  }
  func.func @transform_0(%arg0: i32) -> (i32, i32) {
    %c0_i32 = arith.constant 0 : i32
    %c0_i32_0 = arith.constant 0 : i32
    return %arg0, %c0_i32 : i32, i32
  }
  func.func @transform_1(%arg0: i32) -> (i32, i32) {
    %c0_i32 = arith.constant 0 : i32
    %c0_i32_0 = arith.constant 0 : i32
    return %arg0, %c0_i32 : i32, i32
  }
}

</mosaic_0001>

<bundles_post_ra>
// kernel: tpu_custom_call.1
= control target key start
LH: loop header
LB: loop body
LE: loop exit
PB: predicated region body
PF: predicated region fallthrough
CT: control target
= control target key end

     0   :  { %6 = vsyncpa [#allocation3], 0  ;;  %s116_s0 = inlined_call_operand.hbm [shape: f32[8,256], index: 0, kind: input, shape index: {}, may-alias: {0,1}]   ;;  %s117_s1 = inlined_call_operand.hbm [shape: f32[8,256], index: 1, kind: output, shape index: {}, may-alias: {0,1}]  }
   0x1   :  { %7 = vsyncpa [#allocation4], 0  ;;  %s13_s8 = sshll.u32 %s116_s0, 4  ;;  %s98_s9 = smov [#allocation2]   ;;  %s14_s8 = int_to_ptr.hbm [resolvable:$true] %s13_s8 }
   0x2   :  { %s15_s10 = sshll.u32 %s98_s9, 4  ;;  %s16_s10 = int_to_ptr.vmem [resolvable:$true] %s15_s10 }
   0x3   :  { %18 = dma.hbm_to_vmem [thread:$0]  %s14_s8, 256, %s16_s10, [#allocation3]  }
   0x4   :  { %94 = dma.done.wait [#allocation3], 256  }
   0x5   :  { %95 = vsyncadd [#allocation3], 4294967040  ;;  %s99_s11 = smov [#allocation5]   ;;  %s34_s15 = sshll.u32 %s117_s1, 4  ;;  %v23_v0 = vld [vmem:[#allocation2] sm:$0xff]  ;;  %v24_v1 = vld [vmem:[#allocation2 + $0x8] sm:$0xff]  ;;  %s35_s15 = int_to_ptr.hbm [resolvable:$true] %s34_s15 }
   0x6   :  { %s32_s12 = sshll.u32 %s99_s11, 4  ;;  %25 = vst [vmem:[#allocation5] sm:$0xff] %v23_v0  ;;  %s33_s12 = int_to_ptr.vmem [resolvable:$true] %s32_s12 }
   0x7   :  { %26 = vst [vmem:[#allocation5 + $0x8] sm:$0xff] %v24_v1 }
   0x8   :  { %37 = dma.vmem_to_hbm [thread:$0]  %s33_s12, 256, %s35_s15, [#allocation4]  }
   0x9   :  { %96 = dma.done.wait [#allocation4], 256  }
   0xa   :  { %97 = vsyncadd [#allocation4], 4294967040 }
   0xb   :  { %42 = vsyncpa [#allocation3], 1 }
   0xc   :  { %43 = vsyncpa [#allocation4], 1 }

</bundles_post_ra>
